<compile_context>
chip_gen: v6e
topology: v6e:2x2x1
jax: 0.10.0
libtpu: 0.0.40
codegen_flags: <defaults>
</compile_context>

<pallas_src>
import functools

import jax
import jax.numpy as jnp
from jax.experimental import pallas as pl
from jax.experimental.pallas import tpu as pltpu


# ----------------------------------------------------------------------------
# Kernel: one SAGEConv layer (aggregation accumulated over the K grid axis,
# projection + bias + activation fused in the k == last epilogue).
# ----------------------------------------------------------------------------
def _sage_layer_kernel(adj_ref, xk_ref, xi_ref, w_ref, b_ref, out_ref, acc_ref,
                       *, valid_out, apply_relu, apply_log_softmax):
    k = pl.program_id(1)

    @pl.when(k == 0)
    def _init():
        acc_ref[...] = jnp.zeros_like(acc_ref)

    # Aggregation partial sum: (TM, TK) bf16 @ (TK, Cin_pad) bf16 -> f32 acc.
    acc_ref[...] += jnp.dot(adj_ref[...], xk_ref[...],
                            preferred_element_type=jnp.float32)

    @pl.when(k == pl.num_programs(1) - 1)
    def _epilogue():
        agg = acc_ref[...].astype(jnp.bfloat16)            # (TM, Cin_pad)
        # Fused lin_l/lin_r: [agg | x_self] @ [W_l; W_r]  (single MXU matmul).
        feat = jnp.concatenate([agg, xi_ref[...]], axis=1)  # (TM, 2*Cin_pad)
        z = jnp.dot(feat, w_ref[...],
                    preferred_element_type=jnp.float32) + b_ref[...]
        if apply_relu:
            z = jnp.maximum(z, 0.0)
        if apply_log_softmax:
            # Mask padded channel lanes so they do not perturb the reduction.
            col = jax.lax.broadcasted_iota(jnp.int32, z.shape, 1)
            z = jnp.where(col < valid_out, z, -jnp.inf)
            m = jnp.max(z, axis=1, keepdims=True)
            lse = jnp.log(jnp.sum(jnp.exp(z - m), axis=1, keepdims=True)) + m
            z = z - lse
        out_ref[...] = z.astype(out_ref.dtype)


def _sage_layer(adj, x, w, b, *, out_dtype, tm, tk, valid_out, relu,
                log_softmax):
    np_, cin_p = x.shape
    cout_p = w.shape[1]
    grid = (np_ // tm, np_ // tk)

    kernel = functools.partial(
        _sage_layer_kernel,
        valid_out=valid_out,
        apply_relu=relu,
        apply_log_softmax=log_softmax,
    )

    return pl.pallas_call(
        kernel,
        out_shape=jax.ShapeDtypeStruct((np_, cout_p), out_dtype),
        grid_spec=pltpu.PrefetchScalarGridSpec(
            num_scalar_prefetch=0,
            grid=grid,
            in_specs=[
                # adjacency tile (row block i, neighbor block k)
                pl.BlockSpec((tm, tk), lambda i, k: (i, k)),
                # features of the neighbor (contraction) block
                pl.BlockSpec((tk, cin_p), lambda i, k: (k, 0)),
                # features of the row block itself (root/self term)
                pl.BlockSpec((tm, cin_p), lambda i, k: (i, 0)),
                # stacked [W_l; W_r] — constant block, stays resident
                pl.BlockSpec((2 * cin_p, cout_p), lambda i, k: (0, 0)),
                # bias — constant block
                pl.BlockSpec((1, cout_p), lambda i, k: (0, 0)),
            ],
            out_specs=pl.BlockSpec((tm, cout_p), lambda i, k: (i, 0)),
            scratch_shapes=[pltpu.VMEM((tm, cin_p), jnp.float32)],
        ),
        compiler_params=pltpu.CompilerParams(
            dimension_semantics=("parallel", "arbitrary"),
            vmem_limit_bytes=32 * 1024 * 1024,
        ),
    )(adj, x, x, w, b)


# ----------------------------------------------------------------------------
# Wrapper / glue
# ----------------------------------------------------------------------------
def _round_up(v, m):
    return ((v + m - 1) // m) * m


def _choose_tiles(n):
    """Pick (TM, TK, padded_N) so TM | padded_N and TK | padded_N."""
    n128 = _round_up(n, 128)
    tk = min(512, n128)
    tm = 256 if tk % 256 == 0 else 128
    tm = min(tm, tk)
    np_ = _round_up(n, tk)
    return tm, tk, np_


def _pad2(a, rows, cols):
    return jnp.pad(a, ((0, rows - a.shape[0]), (0, cols - a.shape[1])))


def graphsage_forward(x, edge_index, params):
    """x: [N, Cin] float32; edge_index: [2, E] int32 (row0=src, row1=dst)."""
    n, cin = x.shape
    w1l, w1r, b1, w2l, w2r, b2 = params
    hid = w1l.shape[1]
    cout = w2l.shape[1]

    tm, tk, np_ = _choose_tiles(n)
    cin_p = _round_up(cin, 128)
    hid_p = _round_up(hid, 128)
    cout_p = _round_up(cout, 128)

    # Dense adjacency A[dst, src] = 1, mean-normalized per row (f32 for exact
    # 1/deg), then padded with zeros and cast to bf16 for the MXU.
    src, dst = edge_index[0], edge_index[1]
    adj = jnp.zeros((n, n), jnp.float32).at[dst, src].add(1.0)
    deg = jnp.sum(adj, axis=1, keepdims=True)
    adj = adj / jnp.maximum(deg, 1.0)
    adj_p = _pad2(adj, np_, np_).astype(jnp.bfloat16)

    x_p = _pad2(x.astype(jnp.float32), np_, cin_p).astype(jnp.bfloat16)

    # Stack [W_l; W_r] once in the wrapper (order matches the [agg | x] concat).
    w1 = jnp.concatenate(
        [_pad2(w1l, cin_p, hid_p), _pad2(w1r, cin_p, hid_p)], axis=0
    ).astype(jnp.bfloat16)
    w2 = jnp.concatenate(
        [_pad2(w2l, hid_p, cout_p), _pad2(w2r, hid_p, cout_p)], axis=0
    ).astype(jnp.bfloat16)
    b1_p = _pad2(b1, 1, hid_p).astype(jnp.float32)
    b2_p = _pad2(b2, 1, cout_p).astype(jnp.float32)

    # Layer 1: ReLU epilogue, bf16 output round-trips through HBM.
    h = _sage_layer(adj_p, x_p, w1, b1_p, out_dtype=jnp.bfloat16,
                    tm=tm, tk=tk, valid_out=hid_p, relu=True,
                    log_softmax=False)
    # Layer 2: log_softmax epilogue in f32 (padded lanes masked to -inf).
    z = _sage_layer(adj_p, h, w2, b2_p, out_dtype=jnp.float32,
                    tm=tm, tk=tk, valid_out=cout, relu=False,
                    log_softmax=True)
    return z[:n, :cout]


def init_params(key, in_channels, hidden_channels, out_channels):
    ks = jax.random.split(key, 6)
    s1 = 1.0 / jnp.sqrt(in_channels)
    s2 = 1.0 / jnp.sqrt(hidden_channels)
    # Weights stored as [C_in, C_out] (PyTorch Linear weight transposed).
    w1l = jax.random.uniform(ks[0], (in_channels, hidden_channels), jnp.float32, -s1, s1)
    w1r = jax.random.uniform(ks[1], (in_channels, hidden_channels), jnp.float32, -s1, s1)
    b1 = jax.random.uniform(ks[2], (1, hidden_channels), jnp.float32, -s1, s1)
    w2l = jax.random.uniform(ks[3], (hidden_channels, out_channels), jnp.float32, -s2, s2)
    w2r = jax.random.uniform(ks[4], (hidden_channels, out_channels), jnp.float32, -s2, s2)
    b2 = jax.random.uniform(ks[5], (1, out_channels), jnp.float32, -s2, s2)
    return (w1l, w1r, b1, w2l, w2r, b2)


def _reference(x, edge_index, params):
    """Pure-JAX reference mirroring the kernel's bf16 operand casts."""
    n = x.shape[0]
    adj = jnp.zeros((n, n), jnp.float32).at[edge_index[1], edge_index[0]].add(1.0)
    adj = adj / jnp.maximum(jnp.sum(adj, axis=1, keepdims=True), 1.0)
    w1l, w1r, b1, w2l, w2r, b2 = params

    bf = lambda a: a.astype(jnp.bfloat16).astype(jnp.float32)
    adj_b, x_b = bf(adj), bf(x)

    agg1 = bf(adj_b @ x_b)                                    # f32 acc -> bf16
    h = jnp.maximum(agg1 @ bf(w1l) + x_b @ bf(w1r) + b1, 0.0)
    h = bf(h)                                                 # h stored as bf16
    agg2 = bf(adj_b @ h)
    z = agg2 @ bf(w2l) + h @ bf(w2r) + b2
    return jax.nn.log_softmax(z, axis=1)


if __name__ == "__main__":
    key = jax.random.PRNGKey(0)
    k_x, k_e, k_p = jax.random.split(key, 3)

    num_nodes = 16
    num_edges = 40
    in_channels, hidden_channels, out_channels = 8, 32, 4

    x = jax.random.normal(k_x, (num_nodes, in_channels), jnp.float32)
    edge_index = jax.random.randint(k_e, (2, num_edges), 0, num_nodes, jnp.int32)
    params = init_params(k_p, in_channels, hidden_channels, out_channels)

    out = graphsage_forward(x, edge_index, params)
    out = jax.block_until_ready(out)

    ref = _reference(x, edge_index, params)
    assert out.shape == (num_nodes, out_channels)
    assert bool(jnp.all(jnp.isfinite(out)))
    assert jnp.allclose(out, ref, atol=2e-3, rtol=2e-3), (
        float(jnp.max(jnp.abs(out - ref))))

    print("KERNEL_OK")
</pallas_src>

<mosaic_0001>
module attributes {stable_mosaic.version = 11 : i64} {
  func.func @_sage_layer_kernel(%arg0: i32, %arg1: i32, %arg2: memref<128x128xbf16, #tpu.memory_space<vmem>>, %arg3: memref<128x128xbf16, #tpu.memory_space<vmem>>, %arg4: memref<128x128xbf16, #tpu.memory_space<vmem>>, %arg5: memref<256x128xbf16, #tpu.memory_space<vmem>>, %arg6: memref<1x128xf32, #tpu.memory_space<vmem>>, %arg7: memref<128x128xbf16, #tpu.memory_space<vmem>>, %arg8: memref<128x128xf32, #tpu.memory_space<vmem>>) attributes {dimension_semantics = [#tpu.dimension_semantics<parallel>, #tpu.dimension_semantics<arbitrary>], iteration_bounds = array<i64: 1, 1>, scalar_prefetch = 0 : i64, scratch_operands = 1 : i64, tpu.core_type = #tpu.core_type<tc>, window_params = [{transform_indices = @transform_0, window_bounds = array<i64: 128, 128>}, {transform_indices = @transform_1, window_bounds = array<i64: 128, 128>}, {transform_indices = @transform_2, window_bounds = array<i64: 128, 128>}, {pipeline_mode = #tpu.pipeline_mode<synchronous>, transform_indices = @transform_3, window_bounds = array<i64: 256, 128>}, {pipeline_mode = #tpu.pipeline_mode<synchronous>, transform_indices = @transform_4, window_bounds = array<i64: 1, 128>}, {transform_indices = @transform_5, window_bounds = array<i64: 128, 128>}]} {
    %c0_i32 = arith.constant 0 : i32
    %0 = arith.cmpi eq, %arg1, %c0_i32 : i32
    %1 = arith.extui %0 : i1 to i32
    %c0_i32_0 = arith.constant 0 : i32
    %2 = arith.cmpi ne, %1, %c0_i32_0 : i32
    scf.if %2 {
      %cst_10 = arith.constant 0.000000e+00 : f32
      %12 = vector.broadcast %cst_10 : f32 to vector<128x128xf32>
      %c0_11 = arith.constant 0 : index
      %c0_12 = arith.constant 0 : index
      %13 = vector.load %arg8[%c0_11, %c0_12] : memref<128x128xf32, #tpu.memory_space<vmem>>, vector<128x128xf32>
      tpu.vector_store %arg8[%c0_11, %c0_12], %12 {strides = array<i32>} : memref<128x128xf32, #tpu.memory_space<vmem>>, vector<128x128xf32>,
    } else {
    }
    %c0 = arith.constant 0 : index
    %c0_1 = arith.constant 0 : index
    %3 = vector.load %arg8[%c0, %c0_1] : memref<128x128xf32, #tpu.memory_space<vmem>>, vector<128x128xf32>
    %c0_2 = arith.constant 0 : index
    %c0_3 = arith.constant 0 : index
    %4 = vector.load %arg2[%c0_2, %c0_3] : memref<128x128xbf16, #tpu.memory_space<vmem>>, vector<128x128xbf16>
    %c0_4 = arith.constant 0 : index
    %c0_5 = arith.constant 0 : index
    %5 = vector.load %arg3[%c0_4, %c0_5] : memref<128x128xbf16, #tpu.memory_space<vmem>>, vector<128x128xbf16>
    %cst = arith.constant dense<0.000000e+00> : vector<128x128xf32>
    %6 = tpu.matmul %4, %5, %cst {dimension_numbers = #tpu.dot_dimension_numbers<[1], [0], [0], [1], [0, 0, 1, 1], [], []>} : vector<128x128xbf16>, vector<128x128xbf16>, vector<128x128xf32> -> vector<128x128xf32>
    %7 = arith.addf %3, %6 : vector<128x128xf32>
    %c0_6 = arith.constant 0 : index
    %c0_7 = arith.constant 0 : index
    %8 = vector.load %arg8[%c0_6, %c0_7] : memref<128x128xf32, #tpu.memory_space<vmem>>, vector<128x128xf32>
    tpu.vector_store %arg8[%c0_6, %c0_7], %7 {strides = array<i32>} : memref<128x128xf32, #tpu.memory_space<vmem>>, vector<128x128xf32>,
    %c0_i32_8 = arith.constant 0 : i32
    %9 = arith.cmpi eq, %arg1, %c0_i32_8 : i32
    %10 = arith.extui %9 : i1 to i32
    %c0_i32_9 = arith.constant 0 : i32
    %11 = arith.cmpi ne, %10, %c0_i32_9 : i32
    scf.if %11 {
      %c0_10 = arith.constant 0 : index
      %c0_11 = arith.constant 0 : index
      %12 = vector.load %arg8[%c0_10, %c0_11] : memref<128x128xf32, #tpu.memory_space<vmem>>, vector<128x128xf32>
      %13 = arith.truncf %12 : vector<128x128xf32> to vector<128x128xbf16>
      %c0_12 = arith.constant 0 : index
      %c0_13 = arith.constant 0 : index
      %14 = vector.load %arg4[%c0_12, %c0_13] : memref<128x128xbf16, #tpu.memory_space<vmem>>, vector<128x128xbf16>
      %15 = tpu.concatenate %13, %14 in 1 : vector<128x128xbf16>, vector<128x128xbf16> -> vector<128x256xbf16>
      %c0_14 = arith.constant 0 : index
      %c0_15 = arith.constant 0 : index
      %16 = vector.load %arg5[%c0_14, %c0_15] : memref<256x128xbf16, #tpu.memory_space<vmem>>, vector<256x128xbf16>
      %cst_16 = arith.constant dense<0.000000e+00> : vector<128x128xf32>
      %17 = tpu.matmul %15, %16, %cst_16 {dimension_numbers = #tpu.dot_dimension_numbers<[1], [0], [0], [1], [0, 0, 1, 1], [], []>} : vector<128x256xbf16>, vector<256x128xbf16>, vector<128x128xf32> -> vector<128x128xf32>
      %c0_17 = arith.constant 0 : index
      %c0_18 = arith.constant 0 : index
      %18 = vector.load %arg6[%c0_17, %c0_18] : memref<1x128xf32, #tpu.memory_space<vmem>>, vector<1x128xf32>
      %19 = vector.broadcast %18 : vector<1x128xf32> to vector<128x128xf32>
      %20 = arith.addf %17, %19 : vector<128x128xf32>
      %cst_19 = arith.constant 0.000000e+00 : f32
      %21 = vector.broadcast %cst_19 : f32 to vector<128x128xf32>
      %22 = arith.maximumf %20, %21 : vector<128x128xf32>
      %23 = arith.truncf %22 : vector<128x128xf32> to vector<128x128xbf16>
      %c0_20 = arith.constant 0 : index
      %c0_21 = arith.constant 0 : index
      %24 = vector.load %arg7[%c0_20, %c0_21] : memref<128x128xbf16, #tpu.memory_space<vmem>>, vector<128x128xbf16>
      tpu.vector_store %arg7[%c0_20, %c0_21], %23 {strides = array<i32>} : memref<128x128xbf16, #tpu.memory_space<vmem>>, vector<128x128xbf16>,
    } else {
    }
    return
  }
  func.func @transform_0(%arg0: i32, %arg1: i32) -> (i32, i32) {
    %c0_i32 = arith.constant 0 : i32
    return %arg0, %arg1 : i32, i32
  }
  func.func @transform_1(%arg0: i32, %arg1: i32) -> (i32, i32) {
    %c0_i32 = arith.constant 0 : i32
    %c0_i32_0 = arith.constant 0 : i32
    return %arg1, %c0_i32 : i32, i32
  }
  func.func @transform_2(%arg0: i32, %arg1: i32) -> (i32, i32) {
    %c0_i32 = arith.constant 0 : i32
    %c0_i32_0 = arith.constant 0 : i32
    return %arg0, %c0_i32 : i32, i32
  }
  func.func @transform_3(%arg0: i32, %arg1: i32) -> (i32, i32) {
    %c0_i32 = arith.constant 0 : i32
    %c0_i32_0 = arith.constant 0 : i32
    %c0_i32_1 = arith.constant 0 : i32
    return %c0_i32, %c0_i32_0 : i32, i32
  }
  func.func @transform_4(%arg0: i32, %arg1: i32) -> (i32, i32) {
    %c0_i32 = arith.constant 0 : i32
    %c0_i32_0 = arith.constant 0 : i32
    %c0_i32_1 = arith.constant 0 : i32
    return %c0_i32, %c0_i32_0 : i32, i32
  }
  func.func @transform_5(%arg0: i32, %arg1: i32) -> (i32, i32) {
    %c0_i32 = arith.constant 0 : i32
    %c0_i32_0 = arith.constant 0 : i32
    return %arg0, %c0_i32 : i32, i32
  }
}

</mosaic_0001>

<bundles_post_ra>
// kernel: tpu_custom_call.1
= control target key start
LH: loop header
LB: loop body
LE: loop exit
PB: predicated region body
PF: predicated region fallthrough
CT: control target
= control target key end

     0   :  { %10 = vsyncpa [#allocation4], 0  ;;  %s1299_s0 = inlined_call_operand.hbm [shape: bf16[128,128], index: 0, kind: input, shape index: {}]   ;;  %s1300_s1 = inlined_call_operand.hbm [shape: bf16[128,128], index: 1, kind: input, shape index: {}]   ;;  %s1301_s2 = inlined_call_operand.hbm [shape: bf16[128,128], index: 2, kind: input, shape index: {}]   ;;  %s1302_s3 = inlined_call_operand.hbm [shape: bf16[256,128], index: 3, kind: input, shape index: {}]   ;;  %s1303_s4 = inlined_call_operand.vmem [shape: f32[1,128], index: 4, kind: input, shape index: {}]   ;;  %s1304_s5 = inlined_call_operand.hbm [shape: bf16[128,128], index: 5, kind: output, shape index: {}]  }
   0x1   :  { %11 = vsyncpa [#allocation7], 0 }
   0x2   :  { %12 = vsyncpa [#allocation10], 0 }
   0x3   :  { %13 = vsyncpa [#allocation5], 0  ;;  %s1211_s18 = smov [#allocation6]   ;;  %s1212_s20 = smov [#allocation3]  }
   0x4   :  { %s31_s19 = sshll.u32 %s1211_s18, 4  ;;  %s19_s21 = sshll.u32 %s1212_s20, 4  ;;  %s32_s19 = int_to_ptr.vmem [resolvable:$true] %s31_s19  ;;  %s20_s21 = int_to_ptr.vmem [resolvable:$true] %s19_s21 }
   0x5   :  { %s1111_s22 = scalar_lea.vmem %s32_s19, 1024  ;;  %p1116_p1 = scmp.lt.s32.totalorder %s32_s19, %s32_s19 }
   0x6   :  { %p1112_p0 = scmp.ne.s32.totalorder %s32_s19, %s1111_s22  ;;  %p1117_p2 = scmp.lt.s32.totalorder %s1111_s22, %s1111_s22 }
   0x8   :  { %p1118_p3 = por %p1117_p2, %p1116_p1 }
   0xa   :  { %p1119_p4 = pnand %p1118_p3, %p1112_p0 }
   0xc   :  { %1122 = shalt.err (!%p1119_p4)
}
   0xd   :  { %s1213_s23 = smov 64   ;;  %s1214_s24 = smov 4  }
   0xe   :  { %37 = dma.hbm_to_vmem [thread:$0]  %s1300_s1, 1024, %s32_s19, [#allocation7], %s1213_s23, %s1213_s23, %s1214_s24  }
   0xf   :  { %s1131_s27 = scalar_lea.vmem %s20_s21, 1024  ;;  %p1136_p6 = scmp.lt.s32.totalorder %s20_s21, %s20_s21 }
  0x10   :  { %p1132_p5 = scmp.ne.s32.totalorder %s20_s21, %s1131_s27  ;;  %p1137_p7 = scmp.lt.s32.totalorder %s1131_s27, %s1131_s27 }
  0x12   :  { %p1138_p8 = por %p1137_p7, %p1136_p6 }
  0x14   :  { %p1139_p9 = pnand %p1138_p8, %p1132_p5 }
  0x16   :  { %1142 = shalt.err (!%p1139_p9)
}
  0x17   :  { %25 = dma.hbm_to_vmem [thread:$0]  %s1299_s0, 1024, %s20_s21, [#allocation4], %s1213_s23, %s1213_s23, %s1214_s24  }
  0x18   :  { %s1215_s30 = smov [#allocation8]   ;;  %s1216_s7 = smov [#allocation9]  }
  0x19   :  { %s43_s6 = sshll.u32 %s1215_s30, 4  ;;  %s55_s8 = sshll.u32 %s1216_s7, 4  ;;  %s44_s6 = int_to_ptr.vmem [resolvable:$true] %s43_s6  ;;  %s56_s8 = int_to_ptr.vmem [resolvable:$true] %s55_s8 }
  0x1a   :  { %s1151_s1 = scalar_lea.vmem %s44_s6, 1024  ;;  %p1156_p11 = scmp.lt.s32.totalorder %s44_s6, %s44_s6 }
  0x1b   :  { %p1152_p10 = scmp.ne.s32.totalorder %s44_s6, %s1151_s1  ;;  %p1157_p12 = scmp.lt.s32.totalorder %s1151_s1, %s1151_s1 }
  0x1d   :  { %p1158_p13 = por %p1157_p12, %p1156_p11 }
  0x1f   :  { %p1159_p0 = pnand %p1158_p13, %p1152_p10 }
  0x21   :  { %1162 = shalt.err (!%p1159_p0)
}
  0x22   :  { %49 = dma.hbm_to_vmem [thread:$0]  %s1301_s2, 1024, %s44_s6, [#allocation7], %s1213_s23, %s1213_s23, %s1214_s24  }
  0x23   :  { %s1171_s0 = scalar_lea.vmem %s56_s8, 2048  ;;  %p1176_p2 = scmp.lt.s32.totalorder %s56_s8, %s56_s8 }
  0x24   :  { %p1172_p1 = scmp.ne.s32.totalorder %s56_s8, %s1171_s0  ;;  %p1177_p3 = scmp.lt.s32.totalorder %s1171_s0, %s1171_s0 }
  0x26   :  { %p1178_p4 = por %p1177_p3, %p1176_p2 }
  0x28   :  { %p1179_p5 = pnand %p1178_p4, %p1172_p1 }
  0x2a   :  { %1182 = shalt.err (!%p1179_p5)
}
  0x2b   :  { %61 = dma.hbm_to_vmem [thread:$0]  %s1302_s3, 2048, %s56_s8, [#allocation10], %s1213_s23, %s1213_s23, %s1214_s24  }
  0x2c   :  { %1203 = dma.done.wait [#allocation4], 1024  }
  0x2d   :  { %1204 = vsyncadd [#allocation4], 4294966272 }
  0x2e   :  { %1205 = dma.done.wait [#allocation7], 2048  }
  0x2f   :  { %1206 = vsyncadd [#allocation7], 4294965248 }
  0x30   :  { %1207 = dma.done.wait [#allocation10], 2048  }
  0x31   :  { %1208 = vsyncadd [#allocation10], 4294965248  ;;  %v1063_v0 = vld [vmem:[#allocation6 + $0x38] sm:$0xff]   ;;  %v1064_v1 = vld [vmem:[#allocation6 + $0x30] sm:$0xff]  }
  0x32   :  { %1008 = vmatprep.subr.bf16.mxu0 %v1063_v0  ;;  %v1065_v2 = vld [vmem:[#allocation6 + $0x28] sm:$0xff]   ;;  %v1066_v3 = vld [vmem:[#allocation6 + $0x20] sm:$0xff]   ;;  %v1067_v5 = vld [vmem:[#allocation6 + $0x18] sm:$0xff]  }
  0x33   :  { %1009 = vmatpush3.bf16.msra.mxu0 %v1063_v0  ;;  %v1071_v4 = vld [vmem:[#allocation3] sm:$0xff]   ;;  %v1068_v6 = vld [vmem:[#allocation6 + $0x10] sm:$0xff]   ;;  %v1079_v7 = vld [vmem:[#allocation9 + $0x78] sm:$0xff]  }
  0x34   :  { %1010 = vmatprep.subr.bf16.mxu0 %v1064_v1  ;;  %1024 = vmatprep.mubr.bf16.mxu0 %v1071_v4  ;;  %v1080_v8 = vld [vmem:[#allocation9 + $0x38] sm:$0xff]   ;;  %v1081_v9 = vld [vmem:[#allocation9 + $0x70] sm:$0xff]   ;;  %v1069_v10 = vld [vmem:[#allocation6 + $0x8] sm:$0xff]  }
  0x35   :  { %1040 = vmatprep.subr.bf16.mxu1 %v1079_v7  ;;  %v1082_v11 = vld [vmem:[#allocation9 + $0x30] sm:$0xff]   ;;  %v1083_v12 = vld [vmem:[#allocation9 + $0x68] sm:$0xff]   ;;  %v1070_v13 = vld [vmem:[#allocation6] sm:$0xff]  }
  0x36   :  { %1048 = vmatpush3.bf16.msra.mxu1 %v1080_v8  ;;  %v1084_v14 = vld [vmem:[#allocation9 + $0x28] sm:$0xff]   ;;  %v1085_v15 = vld [vmem:[#allocation9 + $0x60] sm:$0xff]   ;;  %v1087_v18 = vld [vmem:[#allocation9 + $0x58] sm:$0xff]  }
  0x37   :  { %1011 = vmatpush3.bf16.msra.mxu0 %v1064_v1  ;;  %1041 = vmatprep.subr.bf16.mxu1 %v1081_v9  ;;  %v1086_v16 = vld [vmem:[#allocation9 + $0x20] sm:$0xff]   ;;  %v1072_v17 = vld [vmem:[#allocation3 + $0x8] sm:$0xff]   ;;  %v1073_v19 = vld [vmem:[#allocation3 + $0x10] sm:$0xff]  }
  0x38   :  { %1012 = vmatprep.subr.bf16.mxu0 %v1065_v2  ;;  %v1088_v20 = vld [vmem:[#allocation9 + $0x18] sm:$0xff]   ;;  %v1089_v21 = vld [vmem:[#allocation9 + $0x50] sm:$0xff]   ;;  %v1075_v24 = vld [vmem:[#allocation3 + $0x20] sm:$0xff]  }
  0x39   :  { %v1074_v22 = vld [vmem:[#allocation3 + $0x18] sm:$0xff]   ;;  %v1090_v23 = vld [vmem:[#allocation9 + $0x10] sm:$0xff]   ;;  %v1076_v25 = vld [vmem:[#allocation3 + $0x28] sm:$0xff]  }
  0x3a   :  { %1049 = vmatpush3.bf16.msra.mxu1 %v1082_v11  ;;  %v1077_v26 = vld [vmem:[#allocation3 + $0x30] sm:$0xff]   ;;  %v1078_v27 = vld [vmem:[#allocation3 + $0x38] sm:$0xff]   ;;  %v1091_v28 = vld [vmem:[#allocation9 + $0x48] sm:$0xff]  }
  0x3b   :  { %1013 = vmatpush3.bf16.msra.mxu0 %v1065_v2  ;;  %1042 = vmatprep.subr.bf16.mxu1 %v1083_v12  ;;  %v1092_v29 = vld [vmem:[#allocation9 + $0x8] sm:$0xff]   ;;  %v1093_v30 = vld [vmem:[#allocation9 + $0x40] sm:$0xff]   ;;  %v1097_v33 = vld [vmem:[#allocation8 + $0x10] sm:$0xff]  }
  0x3c   :  { %1014 = vmatprep.subr.bf16.mxu0 %v1066_v3  ;;  %v1094_v31 = vld [vmem:[#allocation9] sm:$0xff]   ;;  %644 = vmatprep.mubr.bf16.mxu1 %v1097_v33  ;;  %v1096_v38 = vld [vmem:[#allocation8 + $0x8] sm:$0xff]   ;;  %v1098_v44 = vld [vmem:[#allocation8 + $0x18] sm:$0xff]  }
  0x3d   :  { %v1095_v32 = vld [vmem:[#allocation8] sm:$0xff]   ;;  %v1100_v53 = vld [vmem:[#allocation8 + $0x28] sm:$0xff]   ;;  %v1101_v57 = vld [vmem:[#allocation8 + $0x30] sm:$0xff]  }
  0x3e   :  { %1050 = vmatpush3.bf16.msra.mxu1 %v1084_v14  ;;  %v1099_v49 = vld [vmem:[#allocation8 + $0x20] sm:$0xff]   ;;  %v1102_v61 = vld [vmem:[#allocation8 + $0x38] sm:$0xff]  }
  0x3f   :  { %1015 = vmatpush3.bf16.msra.mxu0 %v1066_v3  ;;  %1043 = vmatprep.subr.bf16.mxu1 %v1085_v15  ;;  %v1275_v3 = vld [vmem:[%s1303_s4] ss:$0 sm:$0xff]  ;;  %s1217_s4 = smov [#allocation11]  }
  0x40   :  { %1016 = vmatprep.subr.bf16.mxu0 %v1067_v5  ;;  %s794_s13 = sshll.u32 %s1217_s4, 4  ;;  %s795_s13 = int_to_ptr.vmem [resolvable:$true] %s794_s13 }
  0x41   :  { %s1183_s14 = scalar_lea.vmem %s795_s13, 1024  ;;  %p1188_p7 = scmp.lt.s32.totalorder %s795_s13, %s795_s13 }
  0x42   :  { %1051 = vmatpush3.bf16.msra.mxu1 %v1086_v16  ;;  %p1184_p6 = scmp.ne.s32.totalorder %s795_s13, %s1183_s14  ;;  %p1189_p8 = scmp.lt.s32.totalorder %s1183_s14, %s1183_s14 }
  0x43   :  { %1017 = vmatpush3.bf16.msra.mxu0 %v1067_v5  ;;  %1044 = vmatprep.subr.bf16.mxu1 %v1087_v18 }
  0x44   :  { %1018 = vmatprep.subr.bf16.mxu0 %v1068_v6  ;;  %p1190_p9 = por %p1189_p8, %p1188_p7 }
  0x46   :  { %1052 = vmatpush3.bf16.msra.mxu1 %v1088_v20  ;;  %p1191_p10 = pnand %p1190_p9, %p1184_p6 }
  0x47   :  { %1019 = vmatpush3.bf16.msra.mxu0 %v1068_v6  ;;  %1045 = vmatprep.subr.bf16.mxu1 %v1089_v21 }
  0x48   :  { %1020 = vmatprep.subr.bf16.mxu0 %v1069_v10 }
  0x4a   :  { %1053 = vmatpush3.bf16.msra.mxu1 %v1090_v23 }
  0x4b   :  { %1021 = vmatpush3.bf16.msra.mxu0 %v1069_v10  ;;  %1046 = vmatprep.subr.bf16.mxu1 %v1091_v28 }
  0x4c   :  { %1022 = vmatprep.subr.bf16.mxu0 %v1070_v13 }
  0x4e   :  { %1054 = vmatpush3.bf16.msra.mxu1 %v1092_v29 }
  0x4f   :  { %1023 = vmatpush3.bf16.msra.mxu0 %v1070_v13  ;;  %1047 = vmatprep.subr.bf16.mxu1 %v1093_v30 }
  0x50   :  { %944 = vmatprep.subr.bf16.mxu0 %v1079_v7 }
  0x52   :  { %1025 = vmatmul.mubr.bf16.vlgmr.msra.gmra.mxu0 %v1072_v17  ;;  %1055 = vmatpush3.bf16.msra.mxu1 %v1094_v31 }
  0x53   :  { %1028 = vmatprep.mubr.bf16.mxu0 %v1073_v19  ;;  %945 = vmatpush3.bf16.msra.mxu0 %v1080_v8 }
  0x54   :  { %946 = vmatprep.subr.bf16.mxu0 %v1081_v9 }
  0x57   :  { %947 = vmatpush3.bf16.msra.mxu0 %v1082_v11 }
  0x58   :  { %948 = vmatprep.subr.bf16.mxu0 %v1083_v12 }
  0x5a   :  { %1029 = vmatmul.mubr.bf16.gmra.mxu0 %v1074_v22 }
  0x5b   :  { %1032 = vmatprep.mubr.bf16.mxu0 %v1075_v24  ;;  %949 = vmatpush3.bf16.msra.mxu0 %v1084_v14 }
  0x5c   :  { %950 = vmatprep.subr.bf16.mxu0 %v1085_v15 }
  0x5f   :  { %951 = vmatpush3.bf16.msra.mxu0 %v1086_v16 }
  0x60   :  { %952 = vmatprep.subr.bf16.mxu0 %v1087_v18 }
  0x62   :  { %1033 = vmatmul.mubr.bf16.gmra.mxu0 %v1076_v25 }
  0x63   :  { %1036 = vmatprep.mubr.bf16.mxu0 %v1077_v26  ;;  %953 = vmatpush3.bf16.msra.mxu0 %v1088_v20 }
  0x64   :  { %954 = vmatprep.subr.bf16.mxu0 %v1089_v21 }
  0x67   :  { %955 = vmatpush3.bf16.msra.mxu0 %v1090_v23 }
  0x68   :  { %956 = vmatprep.subr.bf16.mxu0 %v1091_v28 }
  0x6a   :  { %1037 = vmatmul.mubr.bf16.gmra.mxu0 %v1078_v27 }
  0x6b   :  { %957 = vmatpush3.bf16.msra.mxu0 %v1092_v29  ;;  %628 = vmatprep.mubr.bf16.mxu0 %v1095_v32 }
  0x6c   :  { %958 = vmatprep.subr.bf16.mxu0 %v1093_v30 }
  0x6f   :  { %959 = vmatpush3.bf16.msra.mxu0 %v1094_v31 }
 0x112   :  { %v1026_v34 = vpop.f32.mrf.mxu0 }
 0x114   :  { %v275_v35 = vpop.f32.mrf.mxu0 }
 0x116   :  { %v1027_v36 = vpop.f32.mrf.mxu0 }
 0x117   :  { %v390_v45 = vpack.c.bf16 %v1027_v36, %v1026_v34 }
 0x118   :  { %v278_v37 = vpop.f32.mrf.mxu0 }
 0x119   :  { %v389_v39 = vpack.c.bf16 %v278_v37, %v275_v35 }
 0x11a   :  { %v1030_v40 = vpop.f32.mrf.mxu0 }
 0x11b   :  { %629 = vmatmul.mubr.bf16.vlgmr.msra.gmra.mxu0 %v389_v39 }
 0x11c   :  { %v291_v41 = vpop.f32.mrf.mxu0  ;;  %636 = vmatprep.mubr.bf16.mxu0 %v1096_v38 }
 0x11e   :  { %v1031_v42 = vpop.f32.mrf.mxu0 }
 0x11f   :  { %v392_v50 = vpack.c.bf16 %v1031_v42, %v1030_v40 }
 0x120   :  { %v294_v43 = vpop.f32.mrf.mxu0 }
 0x121   :  { %v391_v46 = vpack.c.bf16 %v294_v43, %v291_v41 }
 0x122   :  { %v1034_v47 = vpop.f32.mrf.mxu0 }
 0x123   :  { %637 = vmatmul.mubr.bf16.gmra.mxu0 %v390_v45  ;;  %645 = vmatmul.mubr.bf16.vlgmr.msra.gmra.mxu1 %v391_v46 }
 0x124   :  { %652 = vmatprep.mubr.bf16.mxu1 %v1098_v44  ;;  %v307_v48 = vpop.f32.mrf.mxu0 }
 0x126   :  { %v1035_v51 = vpop.f32.mrf.mxu0 }
 0x127   :  { %v394_v58 = vpack.c.bf16 %v1035_v51, %v1034_v47 }
 0x128   :  { %v310_v52 = vpop.f32.mrf.mxu0 }
 0x129   :  { %v393_v54 = vpack.c.bf16 %v310_v52, %v307_v48 }
 0x12a   :  { %v1038_v55 = vpop.f32.mrf.mxu0 }
 0x12b   :  { %653 = vmatmul.mubr.bf16.gmra.mxu1 %v392_v50 }
 0x12c   :  { %660 = vmatprep.mubr.bf16.mxu1 %v1099_v49  ;;  %v323_v56 = vpop.f32.mrf.mxu0 }
 0x12e   :  { %v1039_v59 = vpop.f32.mrf.mxu0 }
 0x12f   :  { %v396_v63 = vpack.c.bf16 %v1039_v59, %v1038_v55 }
 0x130   :  { %v326_v60 = vpop.f32.mrf.mxu0 }
 0x131   :  { %v395_v62 = vpack.c.bf16 %v326_v60, %v323_v56 }
 0x133   :  { %661 = vmatmul.mubr.bf16.gmra.mxu1 %v393_v54 }
 0x134   :  { %668 = vmatprep.mubr.bf16.mxu1 %v1100_v53 }
 0x13b   :  { %669 = vmatmul.mubr.bf16.gmra.mxu1 %v394_v58 }
 0x13c   :  { %676 = vmatprep.mubr.bf16.mxu1 %v1101_v57 }
 0x143   :  { %677 = vmatmul.mubr.bf16.gmra.mxu1 %v395_v62 }
 0x144   :  { %684 = vmatprep.mubr.bf16.mxu1 %v1102_v61 }
 0x14b   :  { %685 = vmatmul.mubr.bf16.gmra.mxu1 %v396_v63 }
 0x1db   :  { %v960_v0 = vpop.f32.mrf.mxu0 }
 0x1dd   :  { %v961_v1 = vpop.f32.mrf.mxu0 }
 0x1de   :  { %v962_v2 = vadd.f32 %v961_v1, %v960_v0 }
 0x1df   :  { %v963_v4 = vpop.f32.mrf.mxu0 }
 0x1e0   :  { %v631_v6 = vadd.f32 %v962_v2, %v1275_v3 }
 0x1e1   :  { %v964_v5 = vpop.f32.mrf.mxu0 }
 0x1e2   :  { %v965_v7 = vadd.f32 %v964_v5, %v963_v4  ;;  %v693_v13 = vmax.f32 %v631_v6, 0.0 }
 0x1e3   :  { %v966_v8 = vpop.f32.mrf.mxu0  ;;  %v972_v9 = vpop.f32.mrf.mxu1 }
 0x1e4   :  { %v634_v10 = vadd.f32 %v965_v7, %v1275_v3 }
 0x1e5   :  { %v967_v11 = vpop.f32.mrf.mxu0  ;;  %v973_v12 = vpop.f32.mrf.mxu1 }
 0x1e6   :  { %v694_v14 = vmax.f32 %v634_v10, 0.0  ;;  %v968_v15 = vadd.f32 %v967_v11, %v966_v8  ;;  %v974_v16 = vadd.f32 %v973_v12, %v972_v9 }
 0x1e7   :  { %v969_v17 = vpop.f32.mrf.mxu0  ;;  %v975_v18 = vpop.f32.mrf.mxu1 }
 0x1e8   :  { %v884_v19 = vpack.c.bf16 %v694_v14, %v693_v13  ;;  %v639_v20 = vadd.f32 %v968_v15, %v1275_v3  ;;  %v647_v23 = vadd.f32 %v974_v16, %v1275_v3 }
 0x1e9   :  { %v970_v21 = vpop.f32.mrf.mxu0  ;;  %v976_v22 = vpop.f32.mrf.mxu1 }
 0x1ea   :  { %885 = vst [vmem:[#allocation11] sm:$0xff] %v884_v19   ;;  %v971_v24 = vadd.f32 %v970_v21, %v969_v17  ;;  %v977_v25 = vadd.f32 %v976_v22, %v975_v18  ;;  %v695_v29 = vmax.f32 %v639_v20, 0.0  ;;  %v697_v31 = vmax.f32 %v647_v23, 0.0 }
 0x1eb   :  { %v978_v26 = vpop.f32.mrf.mxu1 }
 0x1ec   :  { %v642_v27 = vadd.f32 %v971_v24, %v1275_v3  ;;  %v650_v28 = vadd.f32 %v977_v25, %v1275_v3 }
 0x1ed   :  { %v979_v30 = vpop.f32.mrf.mxu1 }
 0x1ee   :  { %v696_v32 = vmax.f32 %v642_v27, 0.0  ;;  %v698_v33 = vmax.f32 %v650_v28, 0.0  ;;  %v980_v34 = vadd.f32 %v979_v30, %v978_v26 }
 0x1ef   :  { %v981_v35 = vpop.f32.mrf.mxu1 }
 0x1f0   :  { %v889_v36 = vpack.c.bf16 %v696_v32, %v695_v29  ;;  %v894_v37 = vpack.c.bf16 %v698_v33, %v697_v31  ;;  %v655_v39 = vadd.f32 %v980_v34, %v1275_v3 }
 0x1f1   :  { %v982_v38 = vpop.f32.mrf.mxu1 }
 0x1f2   :  { %921 = vst [vmem:[#allocation11 + $0x8] sm:$0xff] %v889_v36   ;;  %922 = vst [vmem:[#allocation11 + $0x10] sm:$0xff] %v894_v37   ;;  %v983_v40 = vadd.f32 %v982_v38, %v981_v35  ;;  %v699_v44 = vmax.f32 %v655_v39, 0.0 }
 0x1f3   :  { %v984_v41 = vpop.f32.mrf.mxu1 }
 0x1f4   :  { %v658_v42 = vadd.f32 %v983_v40, %v1275_v3 }
 0x1f5   :  { %v985_v43 = vpop.f32.mrf.mxu1 }
 0x1f6   :  { %v700_v45 = vmax.f32 %v658_v42, 0.0  ;;  %v986_v46 = vadd.f32 %v985_v43, %v984_v41 }
 0x1f7   :  { %v987_v47 = vpop.f32.mrf.mxu1 }
 0x1f8   :  { %v899_v48 = vpack.c.bf16 %v700_v45, %v699_v44  ;;  %v663_v50 = vadd.f32 %v986_v46, %v1275_v3 }
 0x1f9   :  { %v988_v49 = vpop.f32.mrf.mxu1 }
 0x1fa   :  { %923 = vst [vmem:[#allocation11 + $0x18] sm:$0xff] %v899_v48   ;;  %v989_v51 = vadd.f32 %v988_v49, %v987_v47  ;;  %v701_v55 = vmax.f32 %v663_v50, 0.0 }
 0x1fb   :  { %v990_v52 = vpop.f32.mrf.mxu1 }
 0x1fc   :  { %v666_v53 = vadd.f32 %v989_v51, %v1275_v3 }
 0x1fd   :  { %v991_v54 = vpop.f32.mrf.mxu1 }
 0x1fe   :  { %v702_v56 = vmax.f32 %v666_v53, 0.0  ;;  %v992_v57 = vadd.f32 %v991_v54, %v990_v52 }
 0x1ff   :  { %v993_v58 = vpop.f32.mrf.mxu1 }
 0x200   :  { %v904_v59 = vpack.c.bf16 %v702_v56, %v701_v55  ;;  %v671_v61 = vadd.f32 %v992_v57, %v1275_v3 }
 0x201   :  { %v994_v60 = vpop.f32.mrf.mxu1 }
 0x202   :  { %924 = vst [vmem:[#allocation11 + $0x20] sm:$0xff] %v904_v59   ;;  %v995_v62 = vadd.f32 %v994_v60, %v993_v58  ;;  %v703_v2 = vmax.f32 %v671_v61, 0.0 }
 0x203   :  { %v996_v63 = vpop.f32.mrf.mxu1 }
 0x204   :  { %v674_v0 = vadd.f32 %v995_v62, %v1275_v3 }
 0x205   :  { %v997_v1 = vpop.f32.mrf.mxu1 }
 0x206   :  { %v704_v4 = vmax.f32 %v674_v0, 0.0  ;;  %v998_v5 = vadd.f32 %v997_v1, %v996_v63 }
 0x207   :  { %v999_v6 = vpop.f32.mrf.mxu1 }
 0x208   :  { %v909_v7 = vpack.c.bf16 %v704_v4, %v703_v2  ;;  %v679_v9 = vadd.f32 %v998_v5, %v1275_v3 }
 0x209   :  { %v1000_v8 = vpop.f32.mrf.mxu1 }
 0x20a   :  { %925 = vst [vmem:[#allocation11 + $0x28] sm:$0xff] %v909_v7   ;;  %v1001_v10 = vadd.f32 %v1000_v8, %v999_v6  ;;  %v705_v14 = vmax.f32 %v679_v9, 0.0 }
 0x20b   :  { %v1002_v11 = vpop.f32.mrf.mxu1 }
 0x20c   :  { %v682_v12 = vadd.f32 %v1001_v10, %v1275_v3 }
 0x20d   :  { %v1003_v13 = vpop.f32.mrf.mxu1 }
 0x20e   :  { %v706_v15 = vmax.f32 %v682_v12, 0.0  ;;  %v1004_v16 = vadd.f32 %v1003_v13, %v1002_v11 }
 0x20f   :  { %v1005_v17 = vpop.f32.mrf.mxu1 }
 0x210   :  { %v914_v18 = vpack.c.bf16 %v706_v15, %v705_v14  ;;  %v687_v20 = vadd.f32 %v1004_v16, %v1275_v3 }
 0x211   :  { %v1006_v19 = vpop.f32.mrf.mxu1 }
 0x212   :  { %926 = vst [vmem:[#allocation11 + $0x30] sm:$0xff] %v914_v18   ;;  %v1007_v21 = vadd.f32 %v1006_v19, %v1005_v17  ;;  %v707_v23 = vmax.f32 %v687_v20, 0.0 }
 0x214   :  { %v690_v22 = vadd.f32 %v1007_v21, %v1275_v3 }
 0x216   :  { %v708_v24 = vmax.f32 %v690_v22, 0.0 }
 0x218   :  { %v919_v25 = vpack.c.bf16 %v708_v24, %v707_v23 }
 0x21a   :  { %927 = vst [vmem:[#allocation11 + $0x38] sm:$0xff] %v919_v25  }
 0x21b   :  { %1194 = shalt.err (!%p1191_p10)
}
 0x21c   :  { %800 = dma.vmem_to_hbm [thread:$0]  %s795_s13, 1024, %s1304_s5, [#allocation5], %s1213_s23, %s1213_s23, %s1214_s24  }
 0x21d   :  { %1209 = dma.done.wait [#allocation5], 1024  }
 0x21e   :  { %1210 = vsyncadd [#allocation5], 4294966272 }
 0x21f   :  { %804 = vsyncpa [#allocation4], 1 }
 0x220   :  { %805 = vsyncpa [#allocation7], 1 }
 0x221   :  { %806 = vsyncpa [#allocation10], 1 }
 0x222   :  { %807 = vsyncpa [#allocation5], 1 }

</bundles_post_ra>
